<compile_context>
chip_gen: v6e
topology: v6e:2x2x1
jax: 0.10.0
libtpu: 0.0.40
codegen_flags: <defaults>
</compile_context>

<pallas_src>
import numpy as np
import jax
import jax.numpy as jnp
from jax.experimental import pallas as pl
from jax.experimental.pallas import tpu as pltpu

_TWO_PI = np.float32(2.0 * np.pi)


def _round_up(x, m):
    return ((x + m - 1) // m) * m


def _rotate_kernel(gamma_ref,            # SMEM (1,) f32
                   h_ref, t_ref, rot_ref,  # VMEM (tile_b, emb_dim) stream dtype
                   out_ref):             # VMEM (tile_b, 1) f32
    """One batch tile: rows on sublanes, features [re | im] on lanes."""
    half = h_ref.shape[-1] // 2

    # Static lane slices of the three fused streams; upcast to f32 for math.
    re_h = h_ref[:, :half].astype(jnp.float32)
    im_h = h_ref[:, half:].astype(jnp.float32)
    re_t = t_ref[:, :half].astype(jnp.float32)
    im_t = t_ref[:, half:].astype(jnp.float32)
    re_r = rot_ref[:, :half].astype(jnp.float32)   # cos(phase)
    im_r = rot_ref[:, half:].astype(jnp.float32)   # sin(phase)

    # Complex rotation of h by r, then difference to t.
    re_diff = re_h * re_r - im_h * im_r - re_t
    im_diff = re_h * im_r + im_h * re_r - im_t

    # f32 squared-L2 over the feature (lane) axis -> (tile_b, 1).
    sq = jnp.sum(re_diff * re_diff + im_diff * im_diff, axis=-1, keepdims=True)
    out_ref[...] = gamma_ref[0] - jnp.sqrt(sq)


def _vmem_limit_bytes():
    """Per-generation scoped VMEM limit (conservative v7x fallback)."""
    cap = 64 * 1024 * 1024
    try:
        cap = int(pltpu.get_tpu_info().vmem_capacity_bytes)
    except Exception:
        pass
    return int(min(cap - 4 * 1024 * 1024, 110 * 1024 * 1024))


def _pick_tile_b(batch, emb_dim, itemsize, vmem_limit):
    """Largest lane-aligned batch tile that keeps 3 double-buffered streams
    inside ~60% of the VMEM limit, with num_tiles >= 2 when batch allows."""
    b_ceil = _round_up(max(int(batch), 1), 128)
    lane_dim = max(emb_dim, 128)                 # VMEM lanes pad to >=128
    per_row = 2 * 3 * lane_dim * itemsize        # 2 bufs x 3 streams
    budget = int(vmem_limit * 0.6)
    tile_b = max(128, (budget // per_row) // 128 * 128)
    # Cap so the "parallel" batch axis has >=2 tiles (v7x has 2 TensorCores).
    cap = b_ceil if b_ceil < 256 else max(128, (b_ceil // 2) // 128 * 128)
    return min(tile_b, cap)


def rotate_forward(entity_emb, relation_emb, gamma, h, r, t,
                   stream_dtype=jnp.bfloat16):
    """RotatE score: gamma - || rot(h, r) - t ||_2, per triple."""
    n_entities, emb_dim = entity_emb.shape
    n_relations, half = relation_emb.shape
    assert emb_dim == 2 * half
    B = int(h.shape[0])

    # One-time per-relation rotation table [cos | sin]  (R, emb_dim) -- tiny.
    phase = relation_emb.astype(jnp.float32) / _TWO_PI
    rot_tab = jnp.concatenate(
        [jnp.cos(phase), jnp.sin(phase)], axis=1).astype(stream_dtype)
    ent = entity_emb.astype(stream_dtype)

    itemsize = np.dtype(stream_dtype).itemsize
    vmem_limit = _vmem_limit_bytes()
    tile_b = _pick_tile_b(B, emb_dim, itemsize, vmem_limit)

    b_pad = _round_up(B, tile_b)
    num_tiles = b_pad // tile_b
    pad = b_pad - B

    h_i = jnp.pad(h.astype(jnp.int32), (0, pad))    # pad with valid index 0
    r_i = jnp.pad(r.astype(jnp.int32), (0, pad))
    t_i = jnp.pad(t.astype(jnp.int32), (0, pad))

    # Batch-major gathers feed the kernel directly (no relayout/transpose pass).
    h_e = jnp.take(ent, h_i, axis=0)                # (b_pad, emb_dim)
    t_e = jnp.take(ent, t_i, axis=0)                # (b_pad, emb_dim)
    rot = jnp.take(rot_tab, r_i, axis=0)            # (b_pad, emb_dim)

    gamma_s = jnp.reshape(jnp.asarray(gamma, jnp.float32), (1,))

    feat_spec = pl.BlockSpec((tile_b, emb_dim), lambda i: (i, 0))

    out = pl.pallas_call(
        _rotate_kernel,
        out_shape=jax.ShapeDtypeStruct((b_pad, 1), jnp.float32),
        grid=(num_tiles,),
        in_specs=[
            pl.BlockSpec(memory_space=pltpu.MemorySpace.SMEM),   # gamma scalar
            feat_spec,                                           # head rows
            feat_spec,                                           # tail rows
            feat_spec,                                           # [cos|sin] rows
        ],
        out_specs=pl.BlockSpec((tile_b, 1), lambda i: (i, 0)),
        compiler_params=pltpu.CompilerParams(
            dimension_semantics=("parallel",),
            vmem_limit_bytes=vmem_limit),
    )(gamma_s, h_e, t_e, rot)

    return out.reshape(-1)[:B]


def rotate_reference(entity_emb, relation_emb, gamma, h, r, t,
                     stream_dtype=jnp.float32):
    """Plain-JAX reference mirroring the PyTorch forward.  With
    stream_dtype=bfloat16 it casts the streamed operands exactly like the
    kernel wrapper so the bf16 path can be validated tightly."""
    ent = entity_emb.astype(stream_dtype).astype(jnp.float32)
    phase = relation_emb.astype(jnp.float32) / _TWO_PI
    cos_tab = jnp.cos(phase).astype(stream_dtype).astype(jnp.float32)
    sin_tab = jnp.sin(phase).astype(stream_dtype).astype(jnp.float32)

    half = relation_emb.shape[1]
    h_e, t_e = ent[h], ent[t]
    re_h, im_h = h_e[:, :half], h_e[:, half:]
    re_t, im_t = t_e[:, :half], t_e[:, half:]
    re_r, im_r = cos_tab[r], sin_tab[r]

    re_diff = re_h * re_r - im_h * im_r - re_t
    im_diff = re_h * im_r + im_h * re_r - im_t
    norm = jnp.sqrt(jnp.sum(re_diff * re_diff + im_diff * im_diff, axis=1))
    return jnp.reshape(jnp.asarray(gamma, jnp.float32), (1,))[0] - norm


if __name__ == "__main__":
    # Small, deterministic setup consistent with RotatE.__init__.
    n_entities, n_relations, emb_dim = 10, 5, 64
    batch = 8

    key = jax.random.PRNGKey(0)
    k_ent, k_rel, k_h, k_r, k_t = jax.random.split(key, 5)

    # nn.init.uniform_(entity_emb.weight, -1, 1)
    entity_emb = jax.random.uniform(
        k_ent, (n_entities, emb_dim), jnp.float32, minval=-1.0, maxval=1.0)
    # nn.init.uniform_(relation_emb.weight, 0, 2*pi)
    relation_emb = jax.random.uniform(
        k_rel, (n_relations, emb_dim // 2), jnp.float32,
        minval=0.0, maxval=2.0 * np.pi)
    # self.gamma = nn.Parameter(torch.Tensor([12.0]))
    gamma = jnp.array([12.0], dtype=jnp.float32)

    h = jax.random.randint(k_h, (batch,), 0, n_entities, dtype=jnp.int32)
    r = jax.random.randint(k_r, (batch,), 0, n_relations, dtype=jnp.int32)
    t = jax.random.randint(k_t, (batch,), 0, n_entities, dtype=jnp.int32)

    # 1) Exact-semantics check: f32 streams vs the module-faithful reference.
    score_f32 = jax.block_until_ready(
        rotate_forward(entity_emb, relation_emb, gamma, h, r, t,
                       stream_dtype=jnp.float32))
    ref_f32 = rotate_reference(entity_emb, relation_emb, gamma, h, r, t)
    np.testing.assert_allclose(np.asarray(score_f32), np.asarray(ref_f32),
                               rtol=1e-5, atol=1e-5)

    # 2) Production path: bf16 streamed operands, f32 accumulation.
    score_bf16 = jax.block_until_ready(
        rotate_forward(entity_emb, relation_emb, gamma, h, r, t,
                       stream_dtype=jnp.bfloat16))
    ref_bf16 = rotate_reference(entity_emb, relation_emb, gamma, h, r, t,
                                stream_dtype=jnp.bfloat16)
    np.testing.assert_allclose(np.asarray(score_bf16), np.asarray(ref_bf16),
                               rtol=1e-4, atol=1e-4)

    print("KERNEL_OK")
</pallas_src>

<mosaic_0001>
module attributes {stable_mosaic.version = 11 : i64} {
  func.func @_rotate_kernel(%arg0: i32, %arg1: memref<1xf32, #tpu.memory_space<smem>>, %arg2: memref<128x64xf32, #tpu.memory_space<vmem>>, %arg3: memref<128x64xf32, #tpu.memory_space<vmem>>, %arg4: memref<128x64xf32, #tpu.memory_space<vmem>>, %arg5: memref<128x1xf32, #tpu.memory_space<vmem>>) attributes {dimension_semantics = [#tpu.dimension_semantics<parallel>], iteration_bounds = array<i64: 1>, scalar_prefetch = 0 : i64, scratch_operands = 0 : i64, tpu.core_type = #tpu.core_type<tc>, window_params = [{transform_indices = @transform_0, window_bounds = array<i64: 1>}, {transform_indices = @transform_1, window_bounds = array<i64: 128, 64>}, {transform_indices = @transform_2, window_bounds = array<i64: 128, 64>}, {transform_indices = @transform_3, window_bounds = array<i64: 128, 64>}, {transform_indices = @transform_4, window_bounds = array<i64: 128, 1>}]} {
    %c0 = arith.constant 0 : index
    %c0_0 = arith.constant 0 : index
    %0 = vector.load %arg2[%c0, %c0_0] : memref<128x64xf32, #tpu.memory_space<vmem>>, vector<128x32xf32>
    %c0_1 = arith.constant 0 : index
    %c32 = arith.constant 32 : index
    %1 = vector.load %arg2[%c0_1, %c32] : memref<128x64xf32, #tpu.memory_space<vmem>>, vector<128x32xf32>
    %c0_2 = arith.constant 0 : index
    %c0_3 = arith.constant 0 : index
    %2 = vector.load %arg3[%c0_2, %c0_3] : memref<128x64xf32, #tpu.memory_space<vmem>>, vector<128x32xf32>
    %c0_4 = arith.constant 0 : index
    %c32_5 = arith.constant 32 : index
    %3 = vector.load %arg3[%c0_4, %c32_5] : memref<128x64xf32, #tpu.memory_space<vmem>>, vector<128x32xf32>
    %c0_6 = arith.constant 0 : index
    %c0_7 = arith.constant 0 : index
    %4 = vector.load %arg4[%c0_6, %c0_7] : memref<128x64xf32, #tpu.memory_space<vmem>>, vector<128x32xf32>
    %c0_8 = arith.constant 0 : index
    %c32_9 = arith.constant 32 : index
    %5 = vector.load %arg4[%c0_8, %c32_9] : memref<128x64xf32, #tpu.memory_space<vmem>>, vector<128x32xf32>
    %6 = arith.mulf %0, %4 : vector<128x32xf32>
    %7 = arith.mulf %1, %5 : vector<128x32xf32>
    %8 = arith.subf %6, %7 : vector<128x32xf32>
    %9 = arith.subf %8, %2 : vector<128x32xf32>
    %10 = arith.mulf %0, %5 : vector<128x32xf32>
    %11 = arith.mulf %1, %4 : vector<128x32xf32>
    %12 = arith.addf %10, %11 : vector<128x32xf32>
    %13 = arith.subf %12, %3 : vector<128x32xf32>
    %14 = arith.mulf %9, %9 : vector<128x32xf32>
    %15 = arith.mulf %13, %13 : vector<128x32xf32>
    %16 = arith.addf %14, %15 : vector<128x32xf32>
    %cst = arith.constant dense<0.000000e+00> : vector<128xf32>
    %17 = vector.multi_reduction <add>, %16, %cst [1] : vector<128x32xf32> to vector<128xf32>
    %18 = vector.shape_cast %17 : vector<128xf32> to vector<128x1xf32>
    %c0_10 = arith.constant 0 : index
    %19 = memref.load %arg1[%c0_10] : memref<1xf32, #tpu.memory_space<smem>>
    %20 = math.sqrt %18 : vector<128x1xf32>
    %21 = vector.broadcast %19 : f32 to vector<128x1xf32>
    %22 = arith.subf %21, %20 : vector<128x1xf32>
    %c0_11 = arith.constant 0 : index
    %c0_12 = arith.constant 0 : index
    %23 = vector.load %arg5[%c0_11, %c0_12] : memref<128x1xf32, #tpu.memory_space<vmem>>, vector<128x1xf32>
    tpu.vector_store %arg5[%c0_11, %c0_12], %22 {strides = array<i32>} : memref<128x1xf32, #tpu.memory_space<vmem>>, vector<128x1xf32>,
    return
  }
  func.func @transform_0(%arg0: i32) -> i32 {
    %c0_i32 = arith.constant 0 : i32
    %c0_i32_0 = arith.constant 0 : i32
    return %c0_i32 : i32
  }
  func.func @transform_1(%arg0: i32) -> (i32, i32) {
    %c0_i32 = arith.constant 0 : i32
    %c0_i32_0 = arith.constant 0 : i32
    return %arg0, %c0_i32 : i32, i32
  }
  func.func @transform_2(%arg0: i32) -> (i32, i32) {
    %c0_i32 = arith.constant 0 : i32
    %c0_i32_0 = arith.constant 0 : i32
    return %arg0, %c0_i32 : i32, i32
  }
  func.func @transform_3(%arg0: i32) -> (i32, i32) {
    %c0_i32 = arith.constant 0 : i32
    %c0_i32_0 = arith.constant 0 : i32
    return %arg0, %c0_i32 : i32, i32
  }
  func.func @transform_4(%arg0: i32) -> (i32, i32) {
    %c0_i32 = arith.constant 0 : i32
    %c0_i32_0 = arith.constant 0 : i32
    return %arg0, %c0_i32 : i32, i32
  }
}

</mosaic_0001>

<bundles_post_ra>
// kernel: tpu_custom_call.1
= control target key start
LH: loop header
LB: loop body
LE: loop exit
PB: predicated region body
PF: predicated region fallthrough
CT: control target
= control target key end

     0   :  { %s764_s19 = smov 32   ;;  %s765_s30 = smov 96   ;;  %vm530_vm0 = vcmask 261120   ;;  %vm709_vm3 = vcmask 7168   ;;  %s1544_s3 = inlined_call_operand.vmem [shape: f32[128,64], index: 3, kind: input, shape index: {}]   ;;  %s1545_s1 = inlined_call_operand.vmem [shape: f32[128,64], index: 1, kind: input, shape index: {}]   ;;  %s1546_s2 = inlined_call_operand.vmem [shape: f32[128,64], index: 2, kind: input, shape index: {}]   ;;  %s1547_s0 = inlined_call_operand.<no memory space> [shape: f32[1], index: 0, kind: input, shape index: {}]   ;;  %s1548_s4 = inlined_call_operand.vmem [shape: f32[128,1], index: 4, kind: output, shape index: {}]  }
   0x1   :  { %v50_v0 = vld [vmem:[%s1544_s3] sm:$0xff]  ;;  %v52_v1 = vld [vmem:[%s1544_s3 + $0x10] sm:$0xff]  ;;  %v51_v2 = vld [vmem:[%s1544_s3 + $0x8] sm:$0xff] }
   0x2   :  { %258 = vrot.lane.b32.xlu0 %v50_v0, %s764_s19  ;;  %262 = vrot.lane.b32.xlu1 %v52_v1, %s764_s19  ;;  %v53_v3 = vld [vmem:[%s1544_s3 + $0x18] sm:$0xff]  ;;  %v54_v4 = vld [vmem:[%s1544_s3 + $0x20] sm:$0xff] }
   0x3   :  { %v55_v5 = vld [vmem:[%s1544_s3 + $0x28] sm:$0xff]  ;;  %v56_v6 = vld [vmem:[%s1544_s3 + $0x30] sm:$0xff]  ;;  %v57_v7 = vld [vmem:[%s1544_s3 + $0x38] sm:$0xff] }
   0x4   :  { %v58_v8 = vld [vmem:[%s1544_s3 + $0x40] sm:$0xff]  ;;  %v59_v9 = vld [vmem:[%s1544_s3 + $0x48] sm:$0xff]  ;;  %v60_v10 = vld [vmem:[%s1544_s3 + $0x50] sm:$0xff] }
   0x5   :  { %v61_v11 = vld [vmem:[%s1544_s3 + $0x58] sm:$0xff]  ;;  %v842_v12 = vld [vmem:[%s1544_s3 + $0x60] sm:$0xff]  ;;  %v847_v13 = vld [vmem:[%s1544_s3 + $0x68] sm:$0xff] }
   0x6   :  { %260 = vrot.lane.b32.xlu0 %v51_v2, %s764_s19  ;;  %264 = vrot.lane.b32.xlu1 %v53_v3, %s764_s19  ;;  %v856_v14 = vld [vmem:[%s1544_s3 + $0x70] sm:$0xff]  ;;  %v861_v15 = vld [vmem:[%s1544_s3 + $0x78] sm:$0xff] }
   0x7   :  { %v866_v16 = vld [vmem:[%s1545_s1] sm:$0xff]  ;;  %v871_v17 = vld [vmem:[%s1545_s1 + $0x8] sm:$0xff]  ;;  %v886_v20 = vld [vmem:[%s1545_s1 + $0x10] sm:$0xff] }
   0x8   :  { %v878_v18 = vmul.f32 %v50_v0, %v866_v16  ;;  %v881_v19 = vmul.f32 %v51_v2, %v871_v17  ;;  %v891_v21 = vld [vmem:[%s1545_s1 + $0x18] sm:$0xff]  ;;  %v898_v22 = vmul.f32 %v52_v1, %v886_v20  ;;  %v906_v24 = vld [vmem:[%s1545_s1 + $0x20] sm:$0xff]  ;;  %v911_v25 = vld [vmem:[%s1545_s1 + $0x28] sm:$0xff] }
   0x9   :  { %v901_v23 = vmul.f32 %v53_v3, %v891_v21  ;;  %v918_v26 = vmul.f32 %v54_v4, %v906_v24  ;;  %v921_v27 = vmul.f32 %v55_v5, %v911_v25  ;;  %v926_v28 = vld [vmem:[%s1545_s1 + $0x30] sm:$0xff]  ;;  %v931_v29 = vld [vmem:[%s1545_s1 + $0x38] sm:$0xff]  ;;  %v966_v32 = vld [vmem:[%s1545_s1 + $0x40] sm:$0xff] }
   0xa   :  { %266 = vrot.lane.b32.xlu0 %v54_v4, %s764_s19  ;;  %268 = vrot.lane.b32.xlu1 %v55_v5, %s764_s19  ;;  %v938_v30 = vmul.f32 %v56_v6, %v926_v28  ;;  %v941_v31 = vmul.f32 %v57_v7, %v931_v29  ;;  %v971_v33 = vld [vmem:[%s1545_s1 + $0x48] sm:$0xff]  ;;  %v978_v34 = vmul.f32 %v58_v8, %v966_v32  ;;  %v986_v36 = vld [vmem:[%s1545_s1 + $0x50] sm:$0xff] }
   0xb   :  { %v981_v35 = vmul.f32 %v59_v9, %v971_v33  ;;  %v991_v37 = vld [vmem:[%s1545_s1 + $0x58] sm:$0xff]  ;;  %v998_v38 = vmul.f32 %v60_v10, %v986_v36  ;;  %v1006_v40 = vld [vmem:[%s1545_s1 + $0x60] sm:$0xff]  ;;  %v1011_v41 = vld [vmem:[%s1545_s1 + $0x68] sm:$0xff] }
   0xc   :  { %v1001_v39 = vmul.f32 %v61_v11, %v991_v37  ;;  %v1019_v42 = vmul.f32 %v842_v12, %v1006_v40  ;;  %v1023_v43 = vmul.f32 %v847_v13, %v1011_v41  ;;  %v1028_v44 = vld [vmem:[%s1545_s1 + $0x70] sm:$0xff]  ;;  %v1033_v45 = vld [vmem:[%s1545_s1 + $0x78] sm:$0xff] }
   0xd   :  { %1564 = vst [vmem:[#allocation6_spill] sm:$0xff] %v1033_v45  ;;  %v1041_v46 = vmul.f32 %v856_v14, %v1028_v44  ;;  %v1045_v47 = vmul.f32 %v861_v15, %v1033_v45 }
   0xe   :  { %270 = vrot.lane.b32.xlu0 %v56_v6, %s764_s19  ;;  %272 = vrot.lane.b32.xlu1 %v57_v7, %s764_s19  ;;  %1561 = vst [vmem:[#allocation3_spill] sm:$0xff] %v1001_v39  ;;  %1562 = vst [vmem:[#allocation4_spill] sm:$0xff] %v1019_v42 }
   0xf   :  { %1563 = vst [vmem:[#allocation5_spill] sm:$0xff] %v1023_v43  ;;  %1565 = vst [vmem:[#allocation7_spill] sm:$0xff] %v1041_v46 }
  0x10   :  { %1566 = vst [vmem:[#allocation8_spill] sm:$0xff] %v1045_v47 }
  0x12   :  { %274 = vrot.lane.b32.xlu0 %v58_v8, %s764_s19  ;;  %276 = vrot.lane.b32.xlu1 %v59_v9, %s764_s19 }
  0x16   :  { %278 = vrot.lane.b32.xlu0 %v60_v10, %s764_s19  ;;  %280 = vrot.lane.b32.xlu1 %v61_v11, %s764_s19 }
  0x1a   :  { %282 = vrot.lane.b32.xlu0 %v842_v12, %s764_s19  ;;  %284 = vrot.lane.b32.xlu1 %v847_v13, %s764_s19 }
  0x1e   :  { %286 = vrot.lane.b32.xlu0 %v856_v14, %s764_s19  ;;  %288 = vrot.lane.b32.xlu1 %v861_v15, %s764_s19 }
  0x22   :  { %98 = vrot.lane.b32.xlu0 %v878_v18, %s765_s30  ;;  %100 = vrot.lane.b32.xlu1 %v881_v19, %s765_s30 }
  0x26   :  { %102 = vrot.lane.b32.xlu0 %v898_v22, %s765_s30  ;;  %104 = vrot.lane.b32.xlu1 %v901_v23, %s765_s30 }
  0x2a   :  { %106 = vrot.lane.b32.xlu0 %v918_v26, %s765_s30  ;;  %108 = vrot.lane.b32.xlu1 %v921_v27, %s765_s30 }
  0x2e   :  { %110 = vrot.lane.b32.xlu0 %v938_v30, %s765_s30  ;;  %112 = vrot.lane.b32.xlu1 %v941_v31, %s765_s30 }
  0x32   :  { %194 = vrot.lane.b32.xlu0 %v50_v0, %s765_s30  ;;  %196 = vrot.lane.b32.xlu1 %v51_v2, %s765_s30 }
  0x36   :  { %198 = vrot.lane.b32.xlu0 %v52_v1, %s765_s30  ;;  %200 = vrot.lane.b32.xlu1 %v53_v3, %s765_s30 }
  0x3a   :  { %202 = vrot.lane.b32.xlu0 %v54_v4, %s765_s30  ;;  %204 = vrot.lane.b32.xlu1 %v55_v5, %s765_s30 }
  0x3e   :  { %206 = vrot.lane.b32.xlu0 %v56_v6, %s765_s30  ;;  %208 = vrot.lane.b32.xlu1 %v57_v7, %s765_s30 }
  0x42   :  { %210 = vrot.lane.b32.xlu0 %v58_v8, %s765_s30  ;;  %212 = vrot.lane.b32.xlu1 %v59_v9, %s765_s30 }
  0x46   :  { %214 = vrot.lane.b32.xlu0 %v60_v10, %s765_s30  ;;  %216 = vrot.lane.b32.xlu1 %v61_v11, %s765_s30 }
  0x4a   :  { %218 = vrot.lane.b32.xlu0 %v842_v12, %s765_s30  ;;  %220 = vrot.lane.b32.xlu1 %v847_v13, %s765_s30 }
  0x4e   :  { %222 = vrot.lane.b32.xlu0 %v856_v14, %s765_s30  ;;  %224 = vrot.lane.b32.xlu1 %v861_v15, %s765_s30 }
  0x52   :  { %114 = vrot.lane.b32.xlu0 %v978_v34, %s765_s30  ;;  %116 = vrot.lane.b32.xlu1 %v981_v35, %s765_s30 }
  0x56   :  { %118 = vrot.lane.b32.xlu0 %v998_v38, %s765_s30  ;;  %120 = vrot.lane.b32.xlu1 %v1001_v39, %s765_s30 }
  0x5a   :  { %122 = vrot.lane.b32.xlu0 %v1019_v42, %s765_s30  ;;  %124 = vrot.lane.b32.xlu1 %v1023_v43, %s765_s30 }
  0x5e   :  { %126 = vrot.lane.b32.xlu0 %v1041_v46, %s765_s30  ;;  %128 = vrot.lane.b32.xlu1 %v1045_v47, %s765_s30 }
  0x74   :  { %v259_v48 = vpop.permute.xlu0 %258  ;;  %v263_v49 = vpop.permute.xlu1 %262 }
  0x75   :  { %v306_v50 = vmul.f32 %v259_v48, %v866_v16  ;;  %v308_v51 = vmul.f32 %v263_v49, %v886_v20  ;;  %v34_v48 = vld [vmem:[%s1546_s2] sm:$0xff] }
  0x77   :  { %338 = vrot.lane.b32.xlu0 %v306_v50, %s765_s30 }
  0x78   :  { %v261_v52 = vpop.permute.xlu0 %260  ;;  %v265_v53 = vpop.permute.xlu1 %264 }
  0x79   :  { %v307_v54 = vmul.f32 %v261_v52, %v871_v17  ;;  %v309_v55 = vmul.f32 %v265_v53, %v891_v21  ;;  %v35_v53 = vld [vmem:[%s1546_s2 + $0x8] sm:$0xff] }
  0x7b   :  { %340 = vrot.lane.b32.xlu1 %v307_v54, %s765_s30  ;;  %342 = vrot.lane.b32.xlu0 %v308_v51, %s765_s30 }
  0x7c   :  { %v267_v56 = vpop.permute.xlu0 %266  ;;  %v269_v57 = vpop.permute.xlu1 %268 }
  0x7d   :  { %v310_v58 = vmul.f32 %v267_v56, %v906_v24  ;;  %v311_v59 = vmul.f32 %v269_v57, %v911_v25  ;;  %v36_v56 = vld [vmem:[%s1546_s2 + $0x10] sm:$0xff] }
  0x7f   :  { %344 = vrot.lane.b32.xlu1 %v309_v55, %s765_s30  ;;  %346 = vrot.lane.b32.xlu0 %v310_v58, %s765_s30 }
  0x80   :  { %v271_v60 = vpop.permute.xlu0 %270  ;;  %v273_v61 = vpop.permute.xlu1 %272 }
  0x81   :  { %v312_v62 = vmul.f32 %v271_v60, %v926_v28  ;;  %v313_v63 = vmul.f32 %v273_v61, %v931_v29 }
  0x83   :  { %348 = vrot.lane.b32.xlu1 %v311_v59, %s765_s30  ;;  %350 = vrot.lane.b32.xlu0 %v312_v62, %s765_s30  ;;  %v37_v59 = vld [vmem:[%s1546_s2 + $0x18] sm:$0xff]  ;;  %v38_v62 = vld [vmem:[%s1546_s2 + $0x20] sm:$0xff] }
  0x84   :  { %v275_v0 = vpop.permute.xlu0 %274  ;;  %v277_v1 = vpop.permute.xlu1 %276 }
  0x85   :  { %v314_v2 = vmul.f32 %v275_v0, %v966_v32  ;;  %v315_v3 = vmul.f32 %v277_v1, %v971_v33  ;;  %v39_v1 = vld [vmem:[%s1546_s2 + $0x28] sm:$0xff] }
  0x87   :  { %352 = vrot.lane.b32.xlu1 %v313_v63, %s765_s30  ;;  %354 = vrot.lane.b32.xlu0 %v314_v2, %s765_s30 }
  0x88   :  { %v279_v4 = vpop.permute.xlu0 %278  ;;  %v281_v5 = vpop.permute.xlu1 %280 }
  0x89   :  { %v316_v6 = vmul.f32 %v279_v4, %v986_v36  ;;  %v317_v7 = vmul.f32 %v281_v5, %v991_v37  ;;  %v40_v4 = vld [vmem:[%s1546_s2 + $0x30] sm:$0xff] }
  0x8b   :  { %356 = vrot.lane.b32.xlu1 %v315_v3, %s765_s30  ;;  %358 = vrot.lane.b32.xlu0 %v316_v6, %s765_s30 }
  0x8c   :  { %v283_v8 = vpop.permute.xlu0 %282  ;;  %v285_v9 = vpop.permute.xlu1 %284 }
  0x8d   :  { %v318_v10 = vmul.f32 %v283_v8, %v1006_v40  ;;  %v319_v11 = vmul.f32 %v285_v9, %v1011_v41 }
  0x8f   :  { %360 = vrot.lane.b32.xlu1 %v317_v7, %s765_s30  ;;  %362 = vrot.lane.b32.xlu0 %v318_v10, %s765_s30  ;;  %v41_v7 = vld [vmem:[%s1546_s2 + $0x38] sm:$0xff]  ;;  %v1141_v10 = vld [vmem:[%s1546_s2 + $0x40] sm:$0xff] }
  0x90   :  { %v287_v12 = vpop.permute.xlu0 %286  ;;  %v289_v13 = vpop.permute.xlu1 %288 }
  0x91   :  { %v320_v14 = vmul.f32 %v287_v12, %v1028_v44  ;;  %v321_v15 = vmul.f32 %v289_v13, %v1033_v45  ;;  %v1154_v12 = vld [vmem:[%s1546_s2 + $0x50] sm:$0xff] }
  0x92   :  { %1567 = vst [vmem:[#allocation9_spill] sm:$0xff] %v1154_v12 }
  0x93   :  { %364 = vrot.lane.b32.xlu1 %v319_v11, %s765_s30  ;;  %366 = vrot.lane.b32.xlu0 %v320_v14, %s765_s30 }
  0x94   :  { %v99_v49 = vpop.permute.xlu0 %98  ;;  %v101_v50 = vpop.permute.xlu1 %100 }
  0x95   :  { %v146_v51 = vsub.f32 %v878_v18, %v99_v49  ;;  %v147_v52 = vsub.f32 %v881_v19, %v101_v50  ;;  %v1181_v50 = vld [vmem:[%s1546_s2 + $0x68] sm:$0xff] }
  0x96   :  { %1570 = vst [vmem:[#allocation12_spill] sm:$0xff] %v1181_v50 }
  0x97   :  { %368 = vrot.lane.b32.xlu1 %v321_v15, %s765_s30  ;;  %418 = vrot.lane.b32.xlu0 %v34_v48, %s765_s30  ;;  %v1092_v54 = vsub.f32 %v146_v51, %v34_v48  ;;  %v1094_v55 = vsub.f32 %v147_v52, %v35_v53  ;;  %v1165_v15 = vld [vmem:[%s1546_s2 + $0x58] sm:$0xff]  ;;  %v1170_v48 = vld [vmem:[%s1546_s2 + $0x60] sm:$0xff] }
  0x98   :  { %v103_v57 = vpop.permute.xlu0 %102  ;;  %v105_v18 = vpop.permute.xlu1 %104  ;;  %1568 = vst [vmem:[#allocation10_spill] sm:$0xff] %v1165_v15  ;;  %1569 = vst [vmem:[#allocation11_spill] sm:$0xff] %v1170_v48  ;;  %v1186_v51 = vld [vmem:[%s1546_s2 + $0x70] sm:$0xff] }
  0x99   :  { %v148_v19 = vsub.f32 %v898_v22, %v103_v57  ;;  %v149_v58 = vsub.f32 %v901_v23, %v105_v18  ;;  %1571 = vst [vmem:[#allocation13_spill] sm:$0xff] %v1186_v51 }
  0x9b   :  { %420 = vrot.lane.b32.xlu1 %v35_v53, %s765_s30  ;;  %422 = vrot.lane.b32.xlu0 %v36_v56, %s765_s30  ;;  %v1106_v60 = vsub.f32 %v148_v19, %v36_v56  ;;  %v1108_v61 = vsub.f32 %v149_v58, %v37_v59  ;;  %v1195_v56 = vld [vmem:[%s1546_s2 + $0x78] sm:$0xff] }
  0x9c   :  { %v107_v63 = vpop.permute.xlu0 %106  ;;  %v109_v22 = vpop.permute.xlu1 %108  ;;  %1572 = vst [vmem:[#allocation14_spill] sm:$0xff] %v1195_v56 }
  0x9d   :  { %v150_v23 = vsub.f32 %v918_v26, %v107_v63  ;;  %v151_v0 = vsub.f32 %v921_v27, %v109_v22 }
  0x9f   :  { %424 = vrot.lane.b32.xlu1 %v37_v59, %s765_s30  ;;  %426 = vrot.lane.b32.xlu0 %v38_v62, %s765_s30  ;;  %v1120_v2 = vsub.f32 %v150_v23, %v38_v62  ;;  %v1122_v3 = vsub.f32 %v151_v0, %v39_v1 }
  0xa0   :  { %v111_v5 = vpop.permute.xlu0 %110  ;;  %v113_v26 = vpop.permute.xlu1 %112 }
  0xa1   :  { %v152_v27 = vsub.f32 %v938_v30, %v111_v5  ;;  %v153_v6 = vsub.f32 %v941_v31, %v113_v26  ;;  %v1149_v31 = vld [vmem:[%s1546_s2 + $0x48] sm:$0xff] }
  0xa3   :  { %428 = vrot.lane.b32.xlu1 %v39_v1, %s765_s30  ;;  %430 = vrot.lane.b32.xlu0 %v40_v4, %s765_s30  ;;  %v1134_v8 = vsub.f32 %v152_v27, %v40_v4  ;;  %v1136_v9 = vsub.f32 %v153_v6, %v41_v7 }
  0xa4   :  { %v195_v30 = vpop.permute.xlu0 %194  ;;  %v197_v11 = vpop.permute.xlu1 %196 }
  0xa7   :  { %432 = vrot.lane.b32.xlu1 %v41_v7, %s765_s30  ;;  %434 = vrot.lane.b32.xlu0 %v1141_v10, %s765_s30 }
  0xa8   :  { %v199_v13 = vpop.permute.xlu0 %198  ;;  %v1160_v14 = vpop.permute.xlu1 %200 }
  0xab   :  { %436 = vrot.lane.b32.xlu1 %v1149_v31, %s765_s30  ;;  %438 = vrot.lane.b32.xlu0 %v1154_v12, %s765_s30 }
  0xac   :  { %v1172_v49 = vpop.permute.xlu0 %202  ;;  %v205_v52 = vpop.permute.xlu1 %204 }
  0xaf   :  { %440 = vrot.lane.b32.xlu1 %v1165_v15, %s765_s30  ;;  %442 = vrot.lane.b32.xlu0 %v1170_v48, %s765_s30 }
  0xb0   :  { %v207_v53 = vpop.permute.xlu0 %206  ;;  %v209_v57 = vpop.permute.xlu1 %208 }
  0xb3   :  { %444 = vrot.lane.b32.xlu1 %v1181_v50, %s765_s30  ;;  %446 = vrot.lane.b32.xlu0 %v1186_v51, %s765_s30 }
  0xb4   :  { %v211_v18 = vpop.permute.xlu0 %210  ;;  %v1199_v19 = vpop.permute.xlu1 %212 }
  0xb7   :  { %448 = vrot.lane.b32.xlu1 %v1195_v56, %s765_s30 }
  0xb8   :  { %v1201_v58 = vpop.permute.xlu0 %214  ;;  %v1203_v59 = vpop.permute.xlu1 %216 }
  0xbc   :  { %v1205_v62 = vpop.permute.xlu0 %218  ;;  %v1207_v63 = vpop.permute.xlu1 %220 }
  0xc0   :  { %v1209_v22 = vpop.permute.xlu0 %222  ;;  %v1211_v23 = vpop.permute.xlu1 %224 }
  0xc1   :  { %1573 = vst [vmem:[#allocation15_spill] sm:$0xff] %v1211_v23 }
  0xc4   :  { %v1213_v0 = vpop.permute.xlu0 %114  ;;  %v1215_v1 = vpop.permute.xlu1 %116 }
  0xc8   :  { %v1217_v4 = vpop.permute.xlu0 %118  ;;  %v1219_v5 = vpop.permute.xlu1 %120 }
  0xc9   :  { %1574 = vst [vmem:[#allocation16_spill] sm:$0xff] %v1219_v5 }
  0xcc   :  { %v1221_v26 = vpop.permute.xlu0 %122  ;;  %v1223_v27 = vpop.permute.xlu1 %124 }
  0xcd   :  { %1575 = vst [vmem:[#allocation17_spill] sm:$0xff] %v1221_v26  ;;  %1576 = vst [vmem:[#allocation18_spill] sm:$0xff] %v1223_v27  ;;  %v242_v26 = vmul.f32 %v195_v30, %v866_v16  ;;  %v485_v16 = vmul.f32 %v1108_v61, %v1108_v61  ;;  %v486_v30 = vmul.f32 %v1120_v2, %v1120_v2 }
  0xd0   :  { %v1225_v6 = vpop.permute.xlu0 %126  ;;  %v1227_v7 = vpop.permute.xlu1 %128 }
  0xd1   :  { %1577 = vst [vmem:[#allocation19_spill] sm:$0xff] %v1225_v6  ;;  %1578 = vst [vmem:[#allocation20_spill] sm:$0xff] %v1227_v7 }
  0xe9   :  { %v339_v56 = vpop.permute.xlu0 %338 }
  0xea   :  { %v386_v39 = vadd.f32 %v339_v56, %v242_v26 }
  0xed   :  { %v341_v45 = vpop.permute.xlu1 %340  ;;  %v343_v47 = vpop.permute.xlu0 %342 }
  0xf1   :  { %v345_v23 = vpop.permute.xlu1 %344  ;;  %v347_v51 = vpop.permute.xlu0 %346 }
  0xf5   :  { %v349_v50 = vpop.permute.xlu1 %348  ;;  %v351_v46 = vpop.permute.xlu0 %350 }
  0xf9   :  { %v1229_v43 = vpop.permute.xlu1 %352  ;;  %v1231_v48 = vpop.permute.xlu0 %354 }
  0xfa   :  { %1579 = vst [vmem:[#allocation21_spill] sm:$0xff] %v1229_v43  ;;  %1580 = vst [vmem:[#allocation22_spill] sm:$0xff] %v1231_v48 }
  0xfd   :  { %v1233_v15 = vpop.permute.xlu1 %356  ;;  %v1235_v12 = vpop.permute.xlu0 %358 }
  0xfe   :  { %1581 = vst [vmem:[#allocation23_spill] sm:$0xff] %v1233_v15  ;;  %1582 = vst [vmem:[#allocation24_spill] sm:$0xff] %v1235_v12  ;;  %v482_v15 = vmul.f32 %v1092_v54, %v1092_v54  ;;  %v243_v12 = vmul.f32 %v197_v11, %v871_v17  ;;  %v1262_v54 = vmul.f32 %v1122_v3, %v1122_v3 }
 0x100   :  { %v387_v17 = vadd.f32 %v341_v45, %v243_v12  ;;  %v247_v45 = vmul.f32 %v205_v52, %v911_v25  ;;  %v252_v25 = vmul.f32 %v1201_v58, %v986_v36  ;;  %v155_v36 = vsub.f32 %v981_v35, %v1215_v1 }
 0x101   :  { %v1237_v27 = vpop.permute.xlu1 %360  ;;  %v1239_v6 = vpop.permute.xlu0 %362 }
 0x102   :  { %1583 = vst [vmem:[#allocation25_spill] sm:$0xff] %v1237_v27  ;;  %v244_v27 = vmul.f32 %v199_v13, %v886_v20  ;;  %v249_v13 = vmul.f32 %v209_v57, %v931_v29  ;;  %v391_v57 = vadd.f32 %v349_v50, %v247_v45  ;;  %v171_v1 = vsub.f32 %v155_v36, %v1149_v31 }
 0x104   :  { %v388_v11 = vadd.f32 %v343_v47, %v244_v27 }
 0x105   :  { %v1241_v7 = vpop.permute.xlu1 %364  ;;  %v1243_v42 = vpop.permute.xlu0 %366 }
 0x106   :  { %1584 = vst [vmem:[#allocation26_spill] sm:$0xff] %v1241_v7  ;;  %1585 = vst [vmem:[#allocation27_spill] sm:$0xff] %v1243_v42  ;;  %v483_v7 = vmul.f32 %v1094_v55, %v1094_v55  ;;  %v484_v42 = vmul.f32 %v1106_v60, %v1106_v60  ;;  %v245_v55 = vmul.f32 %v1160_v14, %v891_v21 }
 0x107   :  { %v246_v60 = vmul.f32 %v1172_v49, %v906_v24  ;;  %v251_v24 = vmul.f32 %v1199_v19, %v971_v33  ;;  %v254_v33 = vmul.f32 %v1205_v62, %v1006_v40 }
 0x109   :  { %v1246_v5 = vpop.permute.xlu1 %368  ;;  %v419_v43 = vpop.permute.xlu0 %418  ;;  %v390_v56 = vadd.f32 %v347_v51, %v246_v60  ;;  %v1589_v60 = vld [vmem:[#allocation3_spill] sm:$0xff] }
 0x10a   :  { %v466_v48 = vsub.f32 %v386_v39, %v419_v43  ;;  %v1266_v39 = vmul.f32 %v1134_v8, %v1134_v8  ;;  %v1270_v43 = vmul.f32 %v1136_v9, %v1136_v9  ;;  %v248_v8 = vmul.f32 %v207_v53, %v926_v28 }
 0x10b   :  { %v250_v9 = vmul.f32 %v211_v18, %v966_v32  ;;  %v154_v28 = vsub.f32 %v978_v34, %v1213_v0 }
 0x10c   :  { %v498_v20 = vmul.f32 %v466_v48, %v466_v48  ;;  %v389_v48 = vadd.f32 %v345_v23, %v245_v55  ;;  %v392_v18 = vadd.f32 %v351_v46, %v248_v8  ;;  %v1588_v55 = vld [vmem:[#allocation16_spill] sm:$0xff]  ;;  %v1592_v8 = vld [vmem:[#allocation9_spill] sm:$0xff] }
 0x10d   :  { %v421_v61 = vpop.permute.xlu1 %420  ;;  %v423_v2 = vpop.permute.xlu0 %422  ;;  %v170_v40 = vsub.f32 %v154_v28, %v1141_v10 }
 0x10e   :  { %v467_v47 = vsub.f32 %v387_v17, %v421_v61  ;;  %v468_v3 = vsub.f32 %v388_v11, %v423_v2  ;;  %v514_v12 = vadd.f32 %v498_v20, %v482_v15  ;;  %v1287_v15 = vmul.f32 %v1203_v59, %v991_v37  ;;  %v1591_v61 = vld [vmem:[#allocation4_spill] sm:$0xff] }
 0x10f   :  { %v1299_v59 = vmul.f32 %v1207_v63, %v1011_v41  ;;  %v156_v41 = vsub.f32 %v998_v38, %v1217_v4  ;;  %v1586_v63 = vld [vmem:[#allocation21_spill] sm:$0xff]  ;;  %v490_v20 = vmul.f32 %v170_v40, %v170_v40 }
 0x110   :  { %v499_v26 = vmul.f32 %v467_v47, %v467_v47  ;;  %v500_v21 = vmul.f32 %v468_v3, %v468_v3  ;;  %v531_v14 = vsel %vm530_vm0, %v514_v12, 0.0  ;;  %v393_v27 = vadd.f32 %v1586_v63, %v249_v13 }
 0x111   :  { %v425_v29 = vpop.permute.xlu1 %424  ;;  %532 = vadd.xlane.f32.xlu0 %v531_v14  ;;  %v427_v32 = vpop.permute.xlu0 %426  ;;  %v491_v12 = vmul.f32 %v171_v1, %v171_v1  ;;  %v172_v13 = vsub.f32 %v156_v41, %v1592_v8 }
 0x112   :  { %v469_v49 = vsub.f32 %v389_v48, %v425_v29  ;;  %v470_v51 = vsub.f32 %v390_v56, %v427_v32  ;;  %v515_v52 = vadd.f32 %v499_v26, %v483_v7  ;;  %v516_v53 = vadd.f32 %v500_v21, %v484_v42  ;;  %v1587_v7 = vld [vmem:[#allocation22_spill] sm:$0xff]  ;;  %v1594_v56 = vld [vmem:[#allocation24_spill] sm:$0xff] }
 0x113   :  { %v1303_v42 = vmul.f32 %v1209_v22, %v1028_v44  ;;  %v394_v44 = vadd.f32 %v1587_v7, %v250_v9  ;;  %v1593_v9 = vld [vmem:[#allocation23_spill] sm:$0xff]  ;;  %v396_v26 = vadd.f32 %v1594_v56, %v252_v25  ;;  %v1595_v32 = vld [vmem:[#allocation10_spill] sm:$0xff] }
 0x114   :  { %v501_v37 = vmul.f32 %v469_v49, %v469_v49  ;;  %v502_v19 = vmul.f32 %v470_v51, %v470_v51  ;;  %v534_v58 = vsel %vm530_vm0, %v515_v52, 0.0  ;;  %v537_v34 = vsel %vm530_vm0, %v516_v53, 0.0  ;;  %v1596_v51 = vld [vmem:[#allocation11_spill] sm:$0xff]  ;;  %v1598_v53 = vld [vmem:[#allocation5_spill] sm:$0xff] }
 0x115   :  { %535 = vadd.xlane.f32.xlu1 %v534_v58  ;;  %v429_v35 = vpop.permute.xlu1 %428  ;;  %538 = vadd.xlane.f32.xlu0 %v537_v34  ;;  %v431_v46 = vpop.permute.xlu0 %430  ;;  %v395_v48 = vadd.f32 %v1593_v9, %v251_v24  ;;  %v1599_v58 = vld [vmem:[#allocation19_spill] sm:$0xff] }
 0x116   :  { %v471_v50 = vsub.f32 %v391_v57, %v429_v35  ;;  %v472_v62 = vsub.f32 %v392_v18, %v431_v46  ;;  %v517_v23 = vadd.f32 %v501_v37, %v485_v16  ;;  %v518_v0 = vadd.f32 %v502_v19, %v486_v30  ;;  %v1590_v30 = vld [vmem:[#allocation17_spill] sm:$0xff]  ;;  %v1600_v34 = vld [vmem:[#allocation7_spill] sm:$0xff] }
 0x117   :  { %v157_v16 = vsub.f32 %v1589_v60, %v1588_v55  ;;  %v158_v31 = vsub.f32 %v1591_v61, %v1590_v30  ;;  %v492_v19 = vmul.f32 %v172_v13, %v172_v13  ;;  %v160_v40 = vsub.f32 %v1600_v34, %v1599_v58  ;;  %v1601_v35 = vld [vmem:[#allocation25_spill] sm:$0xff]  ;;  %v1606_v60 = vld [vmem:[#allocation26_spill] sm:$0xff]  ;;  %v1607_v30 = vld [vmem:[#allocation27_spill] sm:$0xff] }
 0x118   :  { %v503_v22 = vmul.f32 %v471_v50, %v471_v50  ;;  %v504_v17 = vmul.f32 %v472_v62, %v472_v62  ;;  %v540_v10 = vsel %vm530_vm0, %v517_v23, 0.0  ;;  %v543_v11 = vsel %vm530_vm0, %v518_v0, 0.0 }
 0x119   :  { %v433_v2 = vpop.permute.xlu1 %432  ;;  %541 = vadd.xlane.f32.xlu0 %v540_v10  ;;  %544 = vadd.xlane.f32.xlu1 %v543_v11  ;;  %v435_v38 = vpop.permute.xlu0 %434  ;;  %v173_v49 = vsub.f32 %v157_v16, %v1595_v32  ;;  %v174_v52 = vsub.f32 %v158_v31, %v1596_v51  ;;  %v397_v46 = vadd.f32 %v1601_v35, %v1287_v15  ;;  %v1603_v11 = vld [vmem:[#allocation13_spill] sm:$0xff] }
 0x11a   :  { %v473_v4 = vsub.f32 %v393_v27, %v433_v2  ;;  %v474_v45 = vsub.f32 %v394_v44, %v435_v38  ;;  %v519_v47 = vadd.f32 %v503_v22, %v1262_v54  ;;  %v520_v3 = vadd.f32 %v504_v17, %v1266_v39  ;;  %v1597_v54 = vld [vmem:[#allocation18_spill] sm:$0xff]  ;;  %v1602_v27 = vld [vmem:[#allocation12_spill] sm:$0xff] }
 0x11b   :  { %v159_v39 = vsub.f32 %v1598_v53, %v1597_v54  ;;  %v398_v50 = vadd.f32 %v1239_v6, %v254_v33  ;;  %v493_v41 = vmul.f32 %v173_v49, %v173_v49  ;;  %v494_v63 = vmul.f32 %v174_v52, %v174_v52  ;;  %v1604_v33 = vld [vmem:[#allocation20_spill] sm:$0xff] }
 0x11c   :  { %v505_v21 = vmul.f32 %v473_v4, %v473_v4  ;;  %v506_v14 = vmul.f32 %v474_v45, %v474_v45  ;;  %v546_v28 = vsel %vm530_vm0, %v519_v47, 0.0  ;;  %v549_v29 = vsel %vm530_vm0, %v520_v3, 0.0  ;;  %v1608_v45 = vld [vmem:[#allocation6_spill] sm:$0xff]  ;;  %v1609_v47 = vld [vmem:[#allocation15_spill] sm:$0xff] }
 0x11d   :  { %v437_v36 = vpop.permute.xlu1 %436  ;;  %547 = vadd.xlane.f32.xlu0 %v546_v28  ;;  %550 = vadd.xlane.f32.xlu1 %v549_v29  ;;  %v439_v57 = vpop.permute.xlu0 %438  ;;  %v176_v6 = vsub.f32 %v160_v40, %v1603_v11  ;;  %v399_v16 = vadd.f32 %v1606_v60, %v1299_v59  ;;  %v400_v61 = vadd.f32 %v1607_v30, %v1303_v42  ;;  %v1610_v42 = vld [vmem:[#allocation14_spill] sm:$0xff] }
 0x11e   :  { %v475_v24 = vsub.f32 %v395_v48, %v437_v36  ;;  %v476_v18 = vsub.f32 %v396_v26, %v439_v57  ;;  %v521_v25 = vadd.f32 %v505_v21, %v1270_v43  ;;  %v522_v37 = vadd.f32 %v506_v14, %v490_v20  ;;  %v1605_v20 = vld [vmem:[#allocation8_spill] sm:$0xff] }
 0x11f   :  { %v175_v43 = vsub.f32 %v159_v39, %v1602_v27  ;;  %v161_v55 = vsub.f32 %v1605_v20, %v1604_v33  ;;  %v257_v3 = vmul.f32 %v1609_v47, %v1608_v45  ;;  %v496_v26 = vmul.f32 %v176_v6, %v176_v6 }
 0x120   :  { %v507_v62 = vmul.f32 %v475_v24, %v475_v24  ;;  %v508_v23 = vmul.f32 %v476_v18, %v476_v18  ;;  %v552_v0 = vsel %vm530_vm0, %v521_v25, 0.0  ;;  %v555_v1 = vsel %vm530_vm0, %v522_v37, 0.0 }
 0x121   :  { %v441_v7 = vpop.permute.xlu1 %440  ;;  %553 = vadd.xlane.f32.xlu0 %v552_v0  ;;  %556 = vadd.xlane.f32.xlu1 %v555_v1  ;;  %v443_v44 = vpop.permute.xlu0 %442  ;;  %v495_v56 = vmul.f32 %v175_v43, %v175_v43  ;;  %v177_v21 = vsub.f32 %v161_v55, %v1610_v42  ;;  %v401_v14 = vadd.f32 %v1246_v5, %v257_v3 }
 0x122   :  { %v477_v22 = vsub.f32 %v397_v46, %v441_v7  ;;  %v478_v17 = vsub.f32 %v398_v50, %v443_v44  ;;  %v523_v10 = vadd.f32 %v507_v62, %v491_v12  ;;  %v524_v15 = vadd.f32 %v508_v23, %v492_v19 }
 0x123   :  { %v497_v39 = vmul.f32 %v177_v21, %v177_v21  ;;  %v1370_v23 = vstv %s1547_s0 }
 0x124   :  { %v509_v31 = vmul.f32 %v477_v22, %v477_v22  ;;  %v510_v2 = vmul.f32 %v478_v17, %v478_v17  ;;  %v558_v38 = vsel %vm530_vm0, %v523_v10, 0.0  ;;  %v561_v4 = vsel %vm530_vm0, %v524_v15, 0.0 }
 0x125   :  { %v445_v12 = vpop.permute.xlu1 %444  ;;  %559 = vadd.xlane.f32.xlu0 %v558_v38  ;;  %562 = vadd.xlane.f32.xlu1 %v561_v4  ;;  %v447_v8 = vpop.permute.xlu0 %446 }
 0x126   :  { %v479_v13 = vsub.f32 %v399_v16, %v445_v12  ;;  %v480_v9 = vsub.f32 %v400_v61, %v447_v8  ;;  %v525_v48 = vadd.f32 %v509_v31, %v493_v41  ;;  %v526_v59 = vadd.f32 %v510_v2, %v494_v63 }
 0x128   :  { %v511_v28 = vmul.f32 %v479_v13, %v479_v13  ;;  %v512_v29 = vmul.f32 %v480_v9, %v480_v9  ;;  %v564_v32 = vsel %vm530_vm0, %v525_v48, 0.0  ;;  %v567_v49 = vsel %vm530_vm0, %v526_v59, 0.0 }
 0x129   :  { %v449_v51 = vpop.permute.xlu1 %448  ;;  %565 = vadd.xlane.f32.xlu0 %v564_v32  ;;  %568 = vadd.xlane.f32.xlu1 %v567_v49 }
 0x12a   :  { %v481_v52 = vsub.f32 %v401_v14, %v449_v51  ;;  %v527_v54 = vadd.f32 %v511_v28, %v495_v56  ;;  %v528_v53 = vadd.f32 %v512_v29, %v496_v26 }
 0x12c   :  { %v513_v36 = vmul.f32 %v481_v52, %v481_v52  ;;  %v570_v57 = vsel %vm530_vm0, %v527_v54, 0.0  ;;  %v573_v24 = vsel %vm530_vm0, %v528_v53, 0.0 }
 0x12d   :  { %571 = vadd.xlane.f32.xlu0 %v570_v57  ;;  %574 = vadd.xlane.f32.xlu1 %v573_v24 }
 0x12e   :  { %v529_v5 = vadd.f32 %v513_v36, %v497_v39 }
 0x130   :  { %v576_v18 = vsel %vm530_vm0, %v529_v5, 0.0 }
 0x131   :  { %577 = vadd.xlane.f32.xlu0 %v576_v18 }
 0x19a   :  { %v533_v25 = vpop.xlane.xlu0 %532 }
 0x19b   :  { %732 = vrsqrt.f32 %v533_v25  ;;  %vm582_vm1 = vcmp.eq.f32.partialorder %v533_v25, inf  ;;  %v585_v62 = vand.u32 2147483648, %v533_v25  ;;  %vm584_vm2 = vcmp.eq.f32.partialorder %v533_v25, 0.0 }
 0x19e   :  { %v536_v37 = vpop.xlane.xlu1 %535  ;;  %v539_v19 = vpop.xlane.xlu0 %538 }
 0x19f   :  { %734 = vrsqrt.f32 %v536_v37  ;;  %vm589_vm4 = vcmp.eq.f32.partialorder %v536_v37, inf  ;;  %vm591_vm5 = vcmp.eq.f32.partialorder %v536_v37, 0.0  ;;  %v592_v22 = vand.u32 2147483648, %v536_v37 }
 0x1a0   :  { %736 = vrsqrt.f32 %v539_v19  ;;  %vm596_vm6 = vcmp.eq.f32.partialorder %v539_v19, inf  ;;  %v599_v6 = vand.u32 2147483648, %v539_v19  ;;  %vm598_vm7 = vcmp.eq.f32.partialorder %v539_v19, 0.0 }
 0x1a2   :  { %v1355_v58 = vpop.xlane.xlu1 %544  ;;  %v1357_v34 = vpop.xlane.xlu0 %541 }
 0x1a3   :  { %738 = vrsqrt.f32 %v1355_v58  ;;  %vm610_vm8 = vcmp.eq.f32.partialorder %v1355_v58, inf  ;;  %vm612_vm9 = vcmp.eq.f32.partialorder %v1355_v58, 0.0  ;;  %v613_v2 = vand.u32 2147483648, %v1355_v58 }
 0x1a4   :  { %740 = vrsqrt.f32 %v1357_v34  ;;  %vm603_vm10 = vcmp.eq.f32.partialorder %v1357_v34, inf  ;;  %v606_v3 = vand.u32 2147483648, %v1357_v34  ;;  %vm605_vm11 = vcmp.eq.f32.partialorder %v1357_v34, 0.0 }
 0x1a6   :  { %v1361_v40 = vpop.xlane.xlu1 %550  ;;  %v1363_v35 = vpop.xlane.xlu0 %547 }
 0x1a7   :  { %742 = vrsqrt.f32 %v1361_v40  ;;  %vm624_vm12 = vcmp.eq.f32.partialorder %v1361_v40, inf  ;;  %vm626_vm13 = vcmp.eq.f32.partialorder %v1361_v40, 0.0  ;;  %v627_v42 = vand.u32 2147483648, %v1361_v40 }
 0x1a8   :  { %v733_v46 = vpop.eup %732  ;;  %744 = vrsqrt.f32 %v1363_v35  ;;  %vm617_vm14 = vcmp.eq.f32.partialorder %v1363_v35, inf  ;;  %v620_v32 = vand.u32 2147483648, %v1363_v35  ;;  %vm619_vm15 = vcmp.eq.f32.partialorder %v1363_v35, 0.0 }
 0x1a9   :  { %v581_v50 = vmul.f32 %v733_v46, %v533_v25 }
 0x1aa   :  { %v1372_v0 = vpop.xlane.xlu1 %556  ;;  %v1374_v1 = vpop.xlane.xlu0 %553 }
 0x1ab   :  { %v583_v41 = vsel %vm582_vm1, %v533_v25, %v581_v50  ;;  %746 = vrsqrt.f32 %v1372_v0  ;;  %vm638_vm0 = vcmp.eq.f32.partialorder %v1372_v0, inf  ;;  %vm640_vm1 = vcmp.eq.f32.partialorder %v1372_v0, 0.0 }
 0x1ac   :  { %v735_v63 = vpop.eup %734  ;;  %v586_v27 = vsel %vm584_vm2, %v585_v62, %v583_v41  ;;  %748 = vrsqrt.f32 %v1374_v1  ;;  %v641_v24 = vand.u32 2147483648, %v1372_v0  ;;  %vm631_vm2 = vcmp.eq.f32.partialorder %v1374_v1, inf }
 0x1ad   :  { %v737_v43 = vpop.eup %736  ;;  %v693_v7 = vsub.f32 %v1370_v23, %v586_v27  ;;  %v588_v44 = vmul.f32 %v735_v63, %v536_v37 }
 0x1ae   :  { %v595_v17 = vmul.f32 %v737_v43, %v539_v19  ;;  %v1379_v10 = vpop.xlane.xlu1 %562  ;;  %v1381_v15 = vpop.xlane.xlu0 %559 }
 0x1af   :  { %710 = vst.msk [vmem:[%s1548_s4] sm:$0xff] %vm709_vm3, %v693_v7  ;;  %v590_v11 = vsel %vm589_vm4, %v536_v37, %v588_v44  ;;  %750 = vrsqrt.f32 %v1379_v10  ;;  %v634_v37 = vand.u32 2147483648, %v1374_v1  ;;  %vm633_vm4 = vcmp.eq.f32.partialorder %v1374_v1, 0.0 }
 0x1b0   :  { %v739_v33 = vpop.eup %738  ;;  %v593_v20 = vsel %vm591_vm5, %v592_v22, %v590_v11  ;;  %v597_v55 = vsel %vm596_vm6, %v539_v19, %v595_v17  ;;  %752 = vrsqrt.f32 %v1381_v15  ;;  %vm652_vm5 = vcmp.eq.f32.partialorder %v1379_v10, inf }
 0x1b1   :  { %v741_v60 = vpop.eup %740  ;;  %v694_v16 = vsub.f32 %v1370_v23, %v593_v20  ;;  %v600_v30 = vsel %vm598_vm7, %v599_v6, %v597_v55  ;;  %v609_v61 = vmul.f32 %v739_v33, %v1355_v58  ;;  %vm654_vm6 = vcmp.eq.f32.partialorder %v1379_v10, 0.0 }
 0x1b2   :  { %v695_v31 = vsub.f32 %v1370_v23, %v600_v30  ;;  %v602_v38 = vmul.f32 %v741_v60, %v1357_v34  ;;  %v1396_v4 = vpop.xlane.xlu1 %568  ;;  %v1398_v45 = vpop.xlane.xlu0 %565  ;;  %vm645_vm7 = vcmp.eq.f32.partialorder %v1381_v15, inf  ;;  %v648_v63 = vand.u32 2147483648, %v1381_v15 }
 0x1b3   :  { %711 = vst.msk [vmem:[%s1548_s4 + $0x8] sm:$0xff] %vm709_vm3, %v694_v16  ;;  %v611_v47 = vsel %vm610_vm8, %v1355_v58, %v609_v61  ;;  %754 = vrsqrt.f32 %v1396_v4  ;;  %vm647_vm8 = vcmp.eq.f32.partialorder %v1381_v15, 0.0  ;;  %v669_v6 = vand.u32 2147483648, %v1396_v4 }
 0x1b4   :  { %v743_v12 = vpop.eup %742  ;;  %712 = vst.msk [vmem:[%s1548_s4 + $0x10] sm:$0xff] %vm709_vm3, %v695_v31  ;;  %v614_v8 = vsel %vm612_vm9, %v613_v2, %v611_v47  ;;  %v604_v13 = vsel %vm603_vm10, %v1357_v34, %v602_v38  ;;  %756 = vrsqrt.f32 %v1398_v45  ;;  %vm666_vm9 = vcmp.eq.f32.partialorder %v1396_v4, inf }
 0x1b5   :  { %v745_v9 = vpop.eup %744  ;;  %v697_v48 = vsub.f32 %v1370_v23, %v614_v8  ;;  %v607_v59 = vsel %vm605_vm11, %v606_v3, %v604_v13  ;;  %v623_v56 = vmul.f32 %v743_v12, %v1361_v40  ;;  %vm668_vm10 = vcmp.eq.f32.partialorder %v1396_v4, 0.0 }
 0x1b6   :  { %v696_v26 = vsub.f32 %v1370_v23, %v607_v59  ;;  %v616_v21 = vmul.f32 %v745_v9, %v1363_v35  ;;  %v1422_v14 = vpop.xlane.xlu1 %574  ;;  %v1424_v28 = vpop.xlane.xlu0 %571  ;;  %vm659_vm11 = vcmp.eq.f32.partialorder %v1398_v45, inf  ;;  %v662_v20 = vand.u32 2147483648, %v1398_v45 }
 0x1b7   :  { %714 = vst.msk [vmem:[%s1548_s4 + $0x20] sm:$0xff] %vm709_vm3, %v697_v48  ;;  %v625_v29 = vsel %vm624_vm12, %v1361_v40, %v623_v56  ;;  %758 = vrsqrt.f32 %v1422_v14  ;;  %vm661_vm12 = vcmp.eq.f32.partialorder %v1398_v45, 0.0  ;;  %v676_v3 = vand.u32 2147483648, %v1424_v28 }
 0x1b8   :  { %v747_v49 = vpop.eup %746  ;;  %713 = vst.msk [vmem:[%s1548_s4 + $0x18] sm:$0xff] %vm709_vm3, %v696_v26  ;;  %v628_v51 = vsel %vm626_vm13, %v627_v42, %v625_v29  ;;  %v618_v52 = vsel %vm617_vm14, %v1363_v35, %v616_v21  ;;  %760 = vrsqrt.f32 %v1424_v28  ;;  %vm680_vm13 = vcmp.eq.f32.partialorder %v1422_v14, inf }
 0x1b9   :  { %v749_v54 = vpop.eup %748  ;;  %v699_v53 = vsub.f32 %v1370_v23, %v628_v51  ;;  %v621_v39 = vsel %vm619_vm15, %v620_v32, %v618_v52  ;;  %v637_v36 = vmul.f32 %v747_v49, %v1372_v0  ;;  %vm682_vm14 = vcmp.eq.f32.partialorder %v1422_v14, 0.0 }
 0x1ba   :  { %v698_v57 = vsub.f32 %v1370_v23, %v621_v39  ;;  %v630_v5 = vmul.f32 %v749_v54, %v1374_v1  ;;  %v1448_v18 = vpop.xlane.xlu0 %577  ;;  %vm673_vm15 = vcmp.eq.f32.partialorder %v1424_v28, inf }
 0x1bb   :  { %716 = vst.msk [vmem:[%s1548_s4 + $0x30] sm:$0xff] %vm709_vm3, %v699_v53  ;;  %v639_v25 = vsel %vm638_vm0, %v1372_v0, %v637_v36  ;;  %762 = vrsqrt.f32 %v1448_v18  ;;  %v655_v0 = vand.u32 2147483648, %v1379_v10  ;;  %vm675_vm0 = vcmp.eq.f32.partialorder %v1424_v28, 0.0 }
 0x1bc   :  { %v751_v19 = vpop.eup %750  ;;  %715 = vst.msk [vmem:[%s1548_s4 + $0x28] sm:$0xff] %vm709_vm3, %v698_v57  ;;  %v642_v58 = vsel %vm640_vm1, %v641_v24, %v639_v25  ;;  %v632_v34 = vsel %vm631_vm2, %v1374_v1, %v630_v5  ;;  %vm687_vm1 = vcmp.eq.f32.partialorder %v1448_v18, inf  ;;  %v690_v26 = vand.u32 2147483648, %v1448_v18 }
 0x1bd   :  { %v753_v40 = vpop.eup %752  ;;  %v701_v35 = vsub.f32 %v1370_v23, %v642_v58  ;;  %v635_v46 = vsel %vm633_vm4, %v634_v37, %v632_v34  ;;  %v651_v50 = vmul.f32 %v751_v19, %v1379_v10  ;;  %vm689_vm2 = vcmp.eq.f32.partialorder %v1448_v18, 0.0 }
 0x1be   :  { %v700_v62 = vsub.f32 %v1370_v23, %v635_v46  ;;  %v644_v41 = vmul.f32 %v753_v40, %v1381_v15 }
 0x1bf   :  { %718 = vst.msk [vmem:[%s1548_s4 + $0x40] sm:$0xff] %vm709_vm3, %v701_v35  ;;  %v653_v1 = vsel %vm652_vm5, %v1379_v10, %v651_v50 }
 0x1c0   :  { %v755_v27 = vpop.eup %754  ;;  %717 = vst.msk [vmem:[%s1548_s4 + $0x38] sm:$0xff] %vm709_vm3, %v700_v62  ;;  %v656_v43 = vsel %vm654_vm6, %v655_v0, %v653_v1  ;;  %v646_v7 = vsel %vm645_vm7, %v1381_v15, %v644_v41 }
 0x1c1   :  { %v757_v44 = vpop.eup %756  ;;  %v703_v22 = vsub.f32 %v1370_v23, %v656_v43  ;;  %v649_v17 = vsel %vm647_vm8, %v648_v63, %v646_v7  ;;  %v665_v10 = vmul.f32 %v755_v27, %v1396_v4 }
 0x1c2   :  { %v702_v11 = vsub.f32 %v1370_v23, %v649_v17  ;;  %v658_v33 = vmul.f32 %v757_v44, %v1398_v45 }
 0x1c3   :  { %720 = vst.msk [vmem:[%s1548_s4 + $0x50] sm:$0xff] %vm709_vm3, %v703_v22  ;;  %v667_v15 = vsel %vm666_vm9, %v1396_v4, %v665_v10  ;;  %v683_v4 = vand.u32 2147483648, %v1422_v14 }
 0x1c4   :  { %v759_v55 = vpop.eup %758  ;;  %719 = vst.msk [vmem:[%s1548_s4 + $0x48] sm:$0xff] %vm709_vm3, %v702_v11  ;;  %v670_v60 = vsel %vm668_vm10, %v669_v6, %v667_v15  ;;  %v660_v16 = vsel %vm659_vm11, %v1398_v45, %v658_v33 }
 0x1c5   :  { %v761_v30 = vpop.eup %760  ;;  %v705_v61 = vsub.f32 %v1370_v23, %v670_v60  ;;  %v663_v31 = vsel %vm661_vm12, %v662_v20, %v660_v16  ;;  %v679_v2 = vmul.f32 %v759_v55, %v1422_v14 }
 0x1c6   :  { %v704_v38 = vsub.f32 %v1370_v23, %v663_v31  ;;  %v672_v47 = vmul.f32 %v761_v30, %v1424_v28 }
 0x1c7   :  { %722 = vst.msk [vmem:[%s1548_s4 + $0x60] sm:$0xff] %vm709_vm3, %v705_v61  ;;  %v681_v45 = vsel %vm680_vm13, %v1422_v14, %v679_v2 }
 0x1c8   :  { %v763_v12 = vpop.eup %762  ;;  %721 = vst.msk [vmem:[%s1548_s4 + $0x58] sm:$0xff] %vm709_vm3, %v704_v38  ;;  %v684_v8 = vsel %vm682_vm14, %v683_v4, %v681_v45  ;;  %v674_v13 = vsel %vm673_vm15, %v1424_v28, %v672_v47 }
 0x1c9   :  { %v707_v9 = vsub.f32 %v1370_v23, %v684_v8  ;;  %v677_v48 = vsel %vm675_vm0, %v676_v3, %v674_v13  ;;  %v686_v59 = vmul.f32 %v763_v12, %v1448_v18 }
 0x1ca   :  { %v706_v56 = vsub.f32 %v1370_v23, %v677_v48 }
 0x1cb   :  { %724 = vst.msk [vmem:[%s1548_s4 + $0x70] sm:$0xff] %vm709_vm3, %v707_v9  ;;  %v688_v42 = vsel %vm687_vm1, %v1448_v18, %v686_v59 }
 0x1cc   :  { %723 = vst.msk [vmem:[%s1548_s4 + $0x68] sm:$0xff] %vm709_vm3, %v706_v56  ;;  %v691_v21 = vsel %vm689_vm2, %v690_v26, %v688_v42 }
 0x1cd   :  { %v708_v14 = vsub.f32 %v1370_v23, %v691_v21 }
 0x1cf   :  { %725 = vst.msk [vmem:[%s1548_s4 + $0x78] sm:$0xff] %vm709_vm3, %v708_v14 }

</bundles_post_ra>
